<compile_context>
chip_gen: v5e
topology: v5e:2x2
jax: 0.10.0
libtpu: 0.0.40
codegen_flags: <defaults>
</compile_context>

<pallas_src>
import jax
import jax.numpy as jnp
from jax import lax
from jax.experimental import pallas as pl
from jax.experimental.pallas import tpu as pltpu


def _gelu_exact(x):
    # matches torch.nn.GELU() default (erf-based, not tanh approximation)
    return 0.5 * x * (1.0 + lax.erf(x * 0.7071067811865475))


# --------------------------------------------------------------------------------------
# Kernel 1: pre-affine + LSTM recurrence + residual + post-affine, streamed over time.
# --------------------------------------------------------------------------------------
def _lstm_block_kernel(x_ref, alpha_ref, beta_ref, wih_ref, whh_ref, b_ref,
                       g1_ref, palpha_ref, pbeta_ref,
                       y_ref,
                       h_ref, c_ref, hseq_ref, gxi_ref, gxf_ref, gxg_ref, gxo_ref):
    B, TB, D = x_ref.shape

    # Initialize the recurrent state once (first time block).
    @pl.when(pl.program_id(0) == 0)
    def _init():
        h_ref[...] = jnp.zeros_like(h_ref)
        c_ref[...] = jnp.zeros_like(c_ref)

    alpha = alpha_ref[...]        # (1, D)
    beta = beta_ref[...]          # (1, D)

    # Pre-affine for the whole block (batch-first, f32 elementwise).
    xa = x_ref[...] * alpha + beta                                  # (B, TB, D)

    # ---- Hoisted input projection: batched bf16 matmul per gate (bias folded in).
    xa_bf = xa.reshape(B * TB, D).astype(jnp.bfloat16)              # free-ish flatten
    gate_refs = (gxi_ref, gxf_ref, gxg_ref, gxo_ref)
    for g in range(4):
        gx = jnp.dot(xa_bf, wih_ref[g],                             # (B*TB, D) f32 acc
                     preferred_element_type=jnp.float32) + b_ref[g]
        gate_refs[g][...] = gx.reshape(B, TB, D)

    # Recurrent weights loaded once per block, kept f32 (loop is latency-bound).
    whh_i = whh_ref[0]
    whh_f = whh_ref[1]
    whh_g = whh_ref[2]
    whh_o = whh_ref[3]

    # ---- Serial recurrence: only h @ W_hh + gate nonlinearities per step.
    def step(t, carry):
        h, c = carry
        pre_i = gxi_ref[:, t, :] + jnp.dot(h, whh_i, preferred_element_type=jnp.float32)
        pre_f = gxf_ref[:, t, :] + jnp.dot(h, whh_f, preferred_element_type=jnp.float32)
        pre_g = gxg_ref[:, t, :] + jnp.dot(h, whh_g, preferred_element_type=jnp.float32)
        pre_o = gxo_ref[:, t, :] + jnp.dot(h, whh_o, preferred_element_type=jnp.float32)
        i_g = jax.nn.sigmoid(pre_i)
        f_g = jax.nn.sigmoid(pre_f)
        g_g = jnp.tanh(pre_g)
        o_g = jax.nn.sigmoid(pre_o)
        c_new = f_g * c + i_g * g_g
        h_new = o_g * jnp.tanh(c_new)
        hseq_ref[:, t, :] = h_new
        return h_new, c_new

    h_fin, c_fin = lax.fori_loop(0, TB, step, (h_ref[...], c_ref[...]))
    h_ref[...] = h_fin
    c_ref[...] = c_fin

    # ---- Residual + post-affine, batched over the whole block (single dense store).
    y = xa + g1_ref[...] * hseq_ref[...]
    y = y * palpha_ref[...] + pbeta_ref[...]
    y_ref[...] = y


# --------------------------------------------------------------------------------------
# Kernel 2: FeedForward residual, token-tiled ("parallel" grid axis), bf16 matmuls.
# --------------------------------------------------------------------------------------
def _ff_kernel(y_ref, w1_ref, b1_ref, w2_ref, b2_ref, g2_ref, out_ref):
    y = y_ref[...]                                                   # (TN, D) f32
    hid = jnp.dot(y.astype(jnp.bfloat16), w1_ref[...],
                  preferred_element_type=jnp.float32) + b1_ref[...]  # (TN, H)
    hid = _gelu_exact(hid)                                           # f32 elementwise
    ff = jnp.dot(hid.astype(jnp.bfloat16), w2_ref[...],
                 preferred_element_type=jnp.float32) + b2_ref[...]   # (TN, D)
    out_ref[...] = y + g2_ref[...] * ff


# --------------------------------------------------------------------------------------
# Wrapper
# --------------------------------------------------------------------------------------
def _pick_block(n, candidates):
    for c in candidates:
        if c <= n and n % c == 0:
            return c
    return n


def mlp_block_forward(x, params, *, time_block=None, token_block=None):
    """x: (B, T, D) float32 (batch_first, like the PyTorch module). Returns (B, T, D)."""
    x = x.astype(jnp.float32)
    B, T, D = x.shape
    H = params["w1"].shape[1]
    f32, bf16 = jnp.float32, jnp.bfloat16

    TB = time_block if time_block is not None else _pick_block(T, (256, 128, 64, 32, 16, 8))
    assert T % TB == 0, "time_block must divide T"
    N = B * T
    TN = token_block if token_block is not None else _pick_block(N, (512, 256, 128, 64, 32, 16, 8))
    assert N % TN == 0, "token_block must divide B*T"

    # Parameter casts: matmul weights to bf16 (f32 accumulation); recurrent weights,
    # biases, affines and gammas stay f32.
    alpha = params["alpha"].astype(f32)
    beta = params["beta"].astype(f32)
    g1 = params["g1"].astype(f32)
    palpha = params["palpha"].astype(f32)
    pbeta = params["pbeta"].astype(f32)
    wih = params["wih"].astype(bf16)     # (4, D, D) per-gate input weights (i, f, g, o)
    whh = params["whh"].astype(f32)      # (4, D, D) per-gate recurrent weights
    b = params["b"].astype(f32)          # (4, 1, D) combined b_ih + b_hh per gate
    w1 = params["w1"].astype(bf16)       # (D, H)
    b1 = params["b1"].astype(f32)        # (1, H)
    w2 = params["w2"].astype(bf16)       # (H, D)
    b2 = params["b2"].astype(f32)        # (1, D)
    g2 = params["g2"].astype(f32)        # (1, D)

    def full(shape):
        return pl.BlockSpec(shape, lambda i: (0,) * len(shape))

    # ---- Phase 1: LSTM (time-blocked, sequential axis) -------------------------------
    y = pl.pallas_call(
        _lstm_block_kernel,
        out_shape=jax.ShapeDtypeStruct((B, T, D), f32),
        grid=(T // TB,),
        in_specs=[
            pl.BlockSpec((B, TB, D), lambda i: (0, i, 0)),   # x (streamed over time)
            full((1, D)), full((1, D)),                      # alpha, beta
            full((4, D, D)), full((4, D, D)), full((4, 1, D)),  # wih, whh, b
            full((1, D)), full((1, D)), full((1, D)),        # gamma_1, post alpha/beta
        ],
        out_specs=pl.BlockSpec((B, TB, D), lambda i: (0, i, 0)),
        scratch_shapes=[
            pltpu.VMEM((B, D), f32),        # h (persists across time blocks)
            pltpu.VMEM((B, D), f32),        # c
            pltpu.VMEM((B, TB, D), f32),    # h sequence for this block
            pltpu.VMEM((B, TB, D), f32),    # precomputed input-proj, gate i
            pltpu.VMEM((B, TB, D), f32),    # gate f
            pltpu.VMEM((B, TB, D), f32),    # gate g
            pltpu.VMEM((B, TB, D), f32),    # gate o
        ],
        compiler_params=pltpu.CompilerParams(dimension_semantics=("arbitrary",)),
    )(x, alpha, beta, wih, whh, b, g1, palpha, pbeta)

    # ---- Phase 2: FeedForward residual (token-tiled, parallel axis) -------------------
    y2 = y.reshape(N, D)     # free reshape (no transpose)
    out2 = pl.pallas_call(
        _ff_kernel,
        out_shape=jax.ShapeDtypeStruct((N, D), f32),
        grid=(N // TN,),
        in_specs=[
            pl.BlockSpec((TN, D), lambda i: (i, 0)),
            full((D, H)), full((1, H)), full((H, D)), full((1, D)), full((1, D)),
        ],
        out_specs=pl.BlockSpec((TN, D), lambda i: (i, 0)),
        compiler_params=pltpu.CompilerParams(dimension_semantics=("parallel",)),
    )(y2, w1, b1, w2, b2, g2)

    return out2.reshape(B, T, D)


# --------------------------------------------------------------------------------------
# Parameters + pure-JAX reference
# --------------------------------------------------------------------------------------
def make_params(key, dim, mlp_dim, init_values=1e-4, randomize_affine=False):
    ks = jax.random.split(key, 12)
    s = 0.1
    if randomize_affine:
        alpha = 1.0 + s * jax.random.normal(ks[7], (1, dim), jnp.float32)
        beta = s * jax.random.normal(ks[8], (1, dim), jnp.float32)
        palpha = 1.0 + s * jax.random.normal(ks[9], (1, dim), jnp.float32)
        pbeta = s * jax.random.normal(ks[10], (1, dim), jnp.float32)
    else:
        alpha = jnp.ones((1, dim), jnp.float32)
        beta = jnp.zeros((1, dim), jnp.float32)
        palpha = jnp.ones((1, dim), jnp.float32)
        pbeta = jnp.zeros((1, dim), jnp.float32)
    return {
        "alpha": alpha, "beta": beta, "palpha": palpha, "pbeta": pbeta,
        # LSTM weights stored per-gate: wih[g] == weight_ih_l0[g*D:(g+1)*D].T, etc.
        # Gate order i, f, g, o; b[g] == (b_ih + b_hh)[g*D:(g+1)*D].
        "wih": s * jax.random.normal(ks[0], (4, dim, dim), jnp.float32),
        "whh": s * jax.random.normal(ks[1], (4, dim, dim), jnp.float32),
        "b": s * jax.random.normal(ks[2], (4, 1, dim), jnp.float32),
        # FeedForward (weights transposed vs. torch Linear)
        "w1": s * jax.random.normal(ks[3], (dim, mlp_dim), jnp.float32),
        "b1": s * jax.random.normal(ks[4], (1, mlp_dim), jnp.float32),
        "w2": s * jax.random.normal(ks[5], (mlp_dim, dim), jnp.float32),
        "b2": s * jax.random.normal(ks[6], (1, dim), jnp.float32),
        "g1": init_values * jnp.ones((1, dim), jnp.float32),
        "g2": init_values * jnp.ones((1, dim), jnp.float32),
    }


def reference_forward(x, p):
    """Pure-JAX f32 reference mirroring the PyTorch forward (state=None path)."""
    B, T, D = x.shape
    xa = x * p["alpha"] + p["beta"]
    wih, whh, b = p["wih"], p["whh"], p["b"]

    def cell(carry, xt):
        h, c = carry
        pre = [xt @ wih[g] + h @ whh[g] + b[g] for g in range(4)]
        i_g = jax.nn.sigmoid(pre[0])
        f_g = jax.nn.sigmoid(pre[1])
        g_g = jnp.tanh(pre[2])
        o_g = jax.nn.sigmoid(pre[3])
        c_n = f_g * c + i_g * g_g
        h_n = o_g * jnp.tanh(c_n)
        return (h_n, c_n), h_n

    h0 = jnp.zeros((B, D), jnp.float32)
    c0 = jnp.zeros((B, D), jnp.float32)
    _, hs = lax.scan(cell, (h0, c0), jnp.transpose(xa, (1, 0, 2)))
    inter = jnp.transpose(hs, (1, 0, 2))

    y = xa + p["g1"] * inter
    y = y * p["palpha"] + p["pbeta"]
    hid = _gelu_exact(y @ p["w1"] + p["b1"])
    ff = hid @ p["w2"] + p["b2"]
    return y + p["g2"] * ff


if __name__ == "__main__":
    B, T, D, H = 2, 16, 32, 64
    key = jax.random.PRNGKey(0)
    kx, kp = jax.random.split(key)
    x = jax.random.normal(kx, (B, T, D), jnp.float32)
    # init_values / randomized affines chosen so the LSTM and FF paths contribute
    # meaningfully to the output (module default init_values=1e-4 nearly zeroes them).
    params = make_params(kp, D, H, init_values=0.5, randomize_affine=True)

    # time_block=8 / token_block=16 -> both grids have 2 steps, exercising the
    # cross-block h/c carry and the token-tiled FF pipeline.
    out = mlp_block_forward(x, params, time_block=8, token_block=16)
    out = jax.block_until_ready(out)

    ref = reference_forward(x, params)
    assert out.shape == (B, T, D)
    max_err = float(jnp.max(jnp.abs(out - ref)))
    assert jnp.allclose(out, ref, rtol=2e-2, atol=2e-2), f"mismatch vs reference (max abs err {max_err})"
    print("KERNEL_OK")
</pallas_src>

<mosaic_0001>
module attributes {stable_mosaic.version = 11 : i64} {
  func.func @_lstm_block_kernel(%arg0: i32, %arg1: memref<2x8x32xf32, #tpu.memory_space<vmem>>, %arg2: memref<1x32xf32, #tpu.memory_space<vmem>>, %arg3: memref<1x32xf32, #tpu.memory_space<vmem>>, %arg4: memref<4x32x32xbf16, #tpu.memory_space<vmem>>, %arg5: memref<4x32x32xf32, #tpu.memory_space<vmem>>, %arg6: memref<4x1x32xf32, #tpu.memory_space<vmem>>, %arg7: memref<1x32xf32, #tpu.memory_space<vmem>>, %arg8: memref<1x32xf32, #tpu.memory_space<vmem>>, %arg9: memref<1x32xf32, #tpu.memory_space<vmem>>, %arg10: memref<2x8x32xf32, #tpu.memory_space<vmem>>, %arg11: memref<2x32xf32, #tpu.memory_space<vmem>>, %arg12: memref<2x32xf32, #tpu.memory_space<vmem>>, %arg13: memref<2x8x32xf32, #tpu.memory_space<vmem>>, %arg14: memref<2x8x32xf32, #tpu.memory_space<vmem>>, %arg15: memref<2x8x32xf32, #tpu.memory_space<vmem>>, %arg16: memref<2x8x32xf32, #tpu.memory_space<vmem>>, %arg17: memref<2x8x32xf32, #tpu.memory_space<vmem>>) attributes {dimension_semantics = [#tpu.dimension_semantics<arbitrary>], iteration_bounds = array<i64: 2>, scalar_prefetch = 0 : i64, scratch_operands = 7 : i64, tpu.core_type = #tpu.core_type<tc>, window_params = [{transform_indices = @transform_0, window_bounds = array<i64: 2, 8, 32>}, {pipeline_mode = #tpu.pipeline_mode<synchronous>, transform_indices = @transform_1, window_bounds = array<i64: 1, 32>}, {pipeline_mode = #tpu.pipeline_mode<synchronous>, transform_indices = @transform_2, window_bounds = array<i64: 1, 32>}, {pipeline_mode = #tpu.pipeline_mode<synchronous>, transform_indices = @transform_3, window_bounds = array<i64: 4, 32, 32>}, {pipeline_mode = #tpu.pipeline_mode<synchronous>, transform_indices = @transform_4, window_bounds = array<i64: 4, 32, 32>}, {pipeline_mode = #tpu.pipeline_mode<synchronous>, transform_indices = @transform_5, window_bounds = array<i64: 4, 1, 32>}, {pipeline_mode = #tpu.pipeline_mode<synchronous>, transform_indices = @transform_6, window_bounds = array<i64: 1, 32>}, {pipeline_mode = #tpu.pipeline_mode<synchronous>, transform_indices = @transform_7, window_bounds = array<i64: 1, 32>}, {pipeline_mode = #tpu.pipeline_mode<synchronous>, transform_indices = @transform_8, window_bounds = array<i64: 1, 32>}, {transform_indices = @transform_9, window_bounds = array<i64: 2, 8, 32>}]} {
    %c0_i32 = arith.constant 0 : i32
    %0 = arith.cmpi eq, %arg0, %c0_i32 : i32
    %1 = arith.extui %0 : i1 to i32
    %c0_i32_0 = arith.constant 0 : i32
    %2 = arith.cmpi ne, %1, %c0_i32_0 : i32
    scf.if %2 {
      %cst_77 = arith.constant 0.000000e+00 : f32
      %79 = vector.broadcast %cst_77 : f32 to vector<2x32xf32>
      %c0_78 = arith.constant 0 : index
      %c0_79 = arith.constant 0 : index
      %80 = vector.load %arg11[%c0_78, %c0_79] : memref<2x32xf32, #tpu.memory_space<vmem>>, vector<2x32xf32>
      tpu.vector_store %arg11[%c0_78, %c0_79], %79 {strides = array<i32>} : memref<2x32xf32, #tpu.memory_space<vmem>>, vector<2x32xf32>,
      %cst_80 = arith.constant 0.000000e+00 : f32
      %81 = vector.broadcast %cst_80 : f32 to vector<2x32xf32>
      %c0_81 = arith.constant 0 : index
      %c0_82 = arith.constant 0 : index
      %82 = vector.load %arg12[%c0_81, %c0_82] : memref<2x32xf32, #tpu.memory_space<vmem>>, vector<2x32xf32>
      tpu.vector_store %arg12[%c0_81, %c0_82], %81 {strides = array<i32>} : memref<2x32xf32, #tpu.memory_space<vmem>>, vector<2x32xf32>,
    } else {
    }
    %c0 = arith.constant 0 : index
    %c0_1 = arith.constant 0 : index
    %3 = vector.load %arg2[%c0, %c0_1] : memref<1x32xf32, #tpu.memory_space<vmem>>, vector<1x32xf32>
    %c0_2 = arith.constant 0 : index
    %c0_3 = arith.constant 0 : index
    %4 = vector.load %arg3[%c0_2, %c0_3] : memref<1x32xf32, #tpu.memory_space<vmem>>, vector<1x32xf32>
    %c0_4 = arith.constant 0 : index
    %c0_5 = arith.constant 0 : index
    %c0_6 = arith.constant 0 : index
    %5 = vector.load %arg1[%c0_4, %c0_5, %c0_6] : memref<2x8x32xf32, #tpu.memory_space<vmem>>, vector<2x8x32xf32>
    %6 = vector.shape_cast %3 : vector<1x32xf32> to vector<1x1x32xf32>
    %7 = vector.broadcast %6 : vector<1x1x32xf32> to vector<2x8x32xf32>
    %8 = arith.mulf %5, %7 : vector<2x8x32xf32>
    %9 = vector.shape_cast %4 : vector<1x32xf32> to vector<1x1x32xf32>
    %10 = vector.broadcast %9 : vector<1x1x32xf32> to vector<2x8x32xf32>
    %11 = arith.addf %8, %10 : vector<2x8x32xf32>
    %12 = vector.shape_cast %11 : vector<2x8x32xf32> to vector<16x32xf32>
    %13 = arith.truncf %12 : vector<16x32xf32> to vector<16x32xbf16>
    %c0_7 = arith.constant 0 : index
    %c0_8 = arith.constant 0 : index
    %c0_9 = arith.constant 0 : index
    %14 = vector.load %arg4[%c0_7, %c0_8, %c0_9] : memref<4x32x32xbf16, #tpu.memory_space<vmem>>, vector<1x32x32xbf16>
    %15 = vector.shape_cast %14 : vector<1x32x32xbf16> to vector<32x32xbf16>
    %cst = arith.constant dense<0.000000e+00> : vector<16x32xf32>
    %16 = tpu.matmul %13, %15, %cst {dimension_numbers = #tpu.dot_dimension_numbers<[1], [0], [0], [1], [0, 0, 1, 1], [], []>} : vector<16x32xbf16>, vector<32x32xbf16>, vector<16x32xf32> -> vector<16x32xf32>
    %c0_10 = arith.constant 0 : index
    %c0_11 = arith.constant 0 : index
    %c0_12 = arith.constant 0 : index
    %17 = vector.load %arg6[%c0_10, %c0_11, %c0_12] : memref<4x1x32xf32, #tpu.memory_space<vmem>>, vector<1x1x32xf32>
    %18 = vector.shape_cast %17 : vector<1x1x32xf32> to vector<1x32xf32>
    %19 = vector.broadcast %18 : vector<1x32xf32> to vector<16x32xf32>
    %20 = arith.addf %16, %19 : vector<16x32xf32>
    %21 = vector.shape_cast %20 : vector<16x32xf32> to vector<2x8x32xf32>
    %c0_13 = arith.constant 0 : index
    %c0_14 = arith.constant 0 : index
    %c0_15 = arith.constant 0 : index
    %22 = vector.load %arg14[%c0_13, %c0_14, %c0_15] : memref<2x8x32xf32, #tpu.memory_space<vmem>>, vector<2x8x32xf32>
    tpu.vector_store %arg14[%c0_13, %c0_14, %c0_15], %21 {strides = array<i32>} : memref<2x8x32xf32, #tpu.memory_space<vmem>>, vector<2x8x32xf32>,
    %c1 = arith.constant 1 : index
    %c0_16 = arith.constant 0 : index
    %c0_17 = arith.constant 0 : index
    %23 = vector.load %arg4[%c1, %c0_16, %c0_17] : memref<4x32x32xbf16, #tpu.memory_space<vmem>>, vector<1x32x32xbf16>
    %24 = vector.shape_cast %23 : vector<1x32x32xbf16> to vector<32x32xbf16>
    %cst_18 = arith.constant dense<0.000000e+00> : vector<16x32xf32>
    %25 = tpu.matmul %13, %24, %cst_18 {dimension_numbers = #tpu.dot_dimension_numbers<[1], [0], [0], [1], [0, 0, 1, 1], [], []>} : vector<16x32xbf16>, vector<32x32xbf16>, vector<16x32xf32> -> vector<16x32xf32>
    %c1_19 = arith.constant 1 : index
    %c0_20 = arith.constant 0 : index
    %c0_21 = arith.constant 0 : index
    %26 = vector.load %arg6[%c1_19, %c0_20, %c0_21] : memref<4x1x32xf32, #tpu.memory_space<vmem>>, vector<1x1x32xf32>
    %27 = vector.shape_cast %26 : vector<1x1x32xf32> to vector<1x32xf32>
    %28 = vector.broadcast %27 : vector<1x32xf32> to vector<16x32xf32>
    %29 = arith.addf %25, %28 : vector<16x32xf32>
    %30 = vector.shape_cast %29 : vector<16x32xf32> to vector<2x8x32xf32>
    %c0_22 = arith.constant 0 : index
    %c0_23 = arith.constant 0 : index
    %c0_24 = arith.constant 0 : index
    %31 = vector.load %arg15[%c0_22, %c0_23, %c0_24] : memref<2x8x32xf32, #tpu.memory_space<vmem>>, vector<2x8x32xf32>
    tpu.vector_store %arg15[%c0_22, %c0_23, %c0_24], %30 {strides = array<i32>} : memref<2x8x32xf32, #tpu.memory_space<vmem>>, vector<2x8x32xf32>,
    %c2 = arith.constant 2 : index
    %c0_25 = arith.constant 0 : index
    %c0_26 = arith.constant 0 : index
    %32 = vector.load %arg4[%c2, %c0_25, %c0_26] : memref<4x32x32xbf16, #tpu.memory_space<vmem>>, vector<1x32x32xbf16>
    %33 = vector.shape_cast %32 : vector<1x32x32xbf16> to vector<32x32xbf16>
    %cst_27 = arith.constant dense<0.000000e+00> : vector<16x32xf32>
    %34 = tpu.matmul %13, %33, %cst_27 {dimension_numbers = #tpu.dot_dimension_numbers<[1], [0], [0], [1], [0, 0, 1, 1], [], []>} : vector<16x32xbf16>, vector<32x32xbf16>, vector<16x32xf32> -> vector<16x32xf32>
    %c2_28 = arith.constant 2 : index
    %c0_29 = arith.constant 0 : index
    %c0_30 = arith.constant 0 : index
    %35 = vector.load %arg6[%c2_28, %c0_29, %c0_30] : memref<4x1x32xf32, #tpu.memory_space<vmem>>, vector<1x1x32xf32>
    %36 = vector.shape_cast %35 : vector<1x1x32xf32> to vector<1x32xf32>
    %37 = vector.broadcast %36 : vector<1x32xf32> to vector<16x32xf32>
    %38 = arith.addf %34, %37 : vector<16x32xf32>
    %39 = vector.shape_cast %38 : vector<16x32xf32> to vector<2x8x32xf32>
    %c0_31 = arith.constant 0 : index
    %c0_32 = arith.constant 0 : index
    %c0_33 = arith.constant 0 : index
    %40 = vector.load %arg16[%c0_31, %c0_32, %c0_33] : memref<2x8x32xf32, #tpu.memory_space<vmem>>, vector<2x8x32xf32>
    tpu.vector_store %arg16[%c0_31, %c0_32, %c0_33], %39 {strides = array<i32>} : memref<2x8x32xf32, #tpu.memory_space<vmem>>, vector<2x8x32xf32>,
    %c3 = arith.constant 3 : index
    %c0_34 = arith.constant 0 : index
    %c0_35 = arith.constant 0 : index
    %41 = vector.load %arg4[%c3, %c0_34, %c0_35] : memref<4x32x32xbf16, #tpu.memory_space<vmem>>, vector<1x32x32xbf16>
    %42 = vector.shape_cast %41 : vector<1x32x32xbf16> to vector<32x32xbf16>
    %cst_36 = arith.constant dense<0.000000e+00> : vector<16x32xf32>
    %43 = tpu.matmul %13, %42, %cst_36 {dimension_numbers = #tpu.dot_dimension_numbers<[1], [0], [0], [1], [0, 0, 1, 1], [], []>} : vector<16x32xbf16>, vector<32x32xbf16>, vector<16x32xf32> -> vector<16x32xf32>
    %c3_37 = arith.constant 3 : index
    %c0_38 = arith.constant 0 : index
    %c0_39 = arith.constant 0 : index
    %44 = vector.load %arg6[%c3_37, %c0_38, %c0_39] : memref<4x1x32xf32, #tpu.memory_space<vmem>>, vector<1x1x32xf32>
    %45 = vector.shape_cast %44 : vector<1x1x32xf32> to vector<1x32xf32>
    %46 = vector.broadcast %45 : vector<1x32xf32> to vector<16x32xf32>
    %47 = arith.addf %43, %46 : vector<16x32xf32>
    %48 = vector.shape_cast %47 : vector<16x32xf32> to vector<2x8x32xf32>
    %c0_40 = arith.constant 0 : index
    %c0_41 = arith.constant 0 : index
    %c0_42 = arith.constant 0 : index
    %49 = vector.load %arg17[%c0_40, %c0_41, %c0_42] : memref<2x8x32xf32, #tpu.memory_space<vmem>>, vector<2x8x32xf32>
    tpu.vector_store %arg17[%c0_40, %c0_41, %c0_42], %48 {strides = array<i32>} : memref<2x8x32xf32, #tpu.memory_space<vmem>>, vector<2x8x32xf32>,
    %c0_43 = arith.constant 0 : index
    %c0_44 = arith.constant 0 : index
    %c0_45 = arith.constant 0 : index
    %50 = vector.load %arg5[%c0_43, %c0_44, %c0_45] : memref<4x32x32xf32, #tpu.memory_space<vmem>>, vector<1x32x32xf32>
    %51 = vector.shape_cast %50 : vector<1x32x32xf32> to vector<32x32xf32>
    %c1_46 = arith.constant 1 : index
    %c0_47 = arith.constant 0 : index
    %c0_48 = arith.constant 0 : index
    %52 = vector.load %arg5[%c1_46, %c0_47, %c0_48] : memref<4x32x32xf32, #tpu.memory_space<vmem>>, vector<1x32x32xf32>
    %53 = vector.shape_cast %52 : vector<1x32x32xf32> to vector<32x32xf32>
    %c2_49 = arith.constant 2 : index
    %c0_50 = arith.constant 0 : index
    %c0_51 = arith.constant 0 : index
    %54 = vector.load %arg5[%c2_49, %c0_50, %c0_51] : memref<4x32x32xf32, #tpu.memory_space<vmem>>, vector<1x32x32xf32>
    %55 = vector.shape_cast %54 : vector<1x32x32xf32> to vector<32x32xf32>
    %c3_52 = arith.constant 3 : index
    %c0_53 = arith.constant 0 : index
    %c0_54 = arith.constant 0 : index
    %56 = vector.load %arg5[%c3_52, %c0_53, %c0_54] : memref<4x32x32xf32, #tpu.memory_space<vmem>>, vector<1x32x32xf32>
    %57 = vector.shape_cast %56 : vector<1x32x32xf32> to vector<32x32xf32>
    %c0_55 = arith.constant 0 : index
    %c0_56 = arith.constant 0 : index
    %58 = vector.load %arg11[%c0_55, %c0_56] : memref<2x32xf32, #tpu.memory_space<vmem>>, vector<2x32xf32>
    %c0_57 = arith.constant 0 : index
    %c0_58 = arith.constant 0 : index
    %59 = vector.load %arg12[%c0_57, %c0_58] : memref<2x32xf32, #tpu.memory_space<vmem>>, vector<2x32xf32>
    %c0_i32_59 = arith.constant 0 : i32
    %c8_i32 = arith.constant 8 : i32
    %60 = arith.addi %c0_i32_59, %c8_i32 : i32
    %c1_i32 = arith.constant 1 : i32
    %61:2 = scf.for %arg18 = %c0_i32_59 to %60 step %c1_i32 iter_args(%arg19 = %58, %arg20 = %59) -> (vector<2x32xf32>, vector<2x32xf32>)  : i32 {
      %c0_77 = arith.constant 0 : index
      %79 = arith.index_cast %arg18 : i32 to index
      %c0_78 = arith.constant 0 : index
      %80 = vector.load %arg14[%c0_77, %79, %c0_78] : memref<2x8x32xf32, #tpu.memory_space<vmem>>, vector<2x1x32xf32>
      %81 = vector.shape_cast %80 : vector<2x1x32xf32> to vector<2x32xf32>
      %cst_79 = arith.constant dense<0.000000e+00> : vector<2x32xf32>
      %82 = tpu.matmul %arg19, %51, %cst_79 {dimension_numbers = #tpu.dot_dimension_numbers<[1], [0], [0], [1], [0, 0, 1, 1], [], []>} : vector<2x32xf32>, vector<32x32xf32>, vector<2x32xf32> -> vector<2x32xf32>
      %83 = arith.addf %81, %82 : vector<2x32xf32>
      %c0_80 = arith.constant 0 : index
      %84 = arith.index_cast %arg18 : i32 to index
      %c0_81 = arith.constant 0 : index
      %85 = vector.load %arg15[%c0_80, %84, %c0_81] : memref<2x8x32xf32, #tpu.memory_space<vmem>>, vector<2x1x32xf32>
      %86 = vector.shape_cast %85 : vector<2x1x32xf32> to vector<2x32xf32>
      %cst_82 = arith.constant dense<0.000000e+00> : vector<2x32xf32>
      %87 = tpu.matmul %arg19, %53, %cst_82 {dimension_numbers = #tpu.dot_dimension_numbers<[1], [0], [0], [1], [0, 0, 1, 1], [], []>} : vector<2x32xf32>, vector<32x32xf32>, vector<2x32xf32> -> vector<2x32xf32>
      %88 = arith.addf %86, %87 : vector<2x32xf32>
      %c0_83 = arith.constant 0 : index
      %89 = arith.index_cast %arg18 : i32 to index
      %c0_84 = arith.constant 0 : index
      %90 = vector.load %arg16[%c0_83, %89, %c0_84] : memref<2x8x32xf32, #tpu.memory_space<vmem>>, vector<2x1x32xf32>
      %91 = vector.shape_cast %90 : vector<2x1x32xf32> to vector<2x32xf32>
      %cst_85 = arith.constant dense<0.000000e+00> : vector<2x32xf32>
      %92 = tpu.matmul %arg19, %55, %cst_85 {dimension_numbers = #tpu.dot_dimension_numbers<[1], [0], [0], [1], [0, 0, 1, 1], [], []>} : vector<2x32xf32>, vector<32x32xf32>, vector<2x32xf32> -> vector<2x32xf32>
      %93 = arith.addf %91, %92 : vector<2x32xf32>
      %c0_86 = arith.constant 0 : index
      %94 = arith.index_cast %arg18 : i32 to index
      %c0_87 = arith.constant 0 : index
      %95 = vector.load %arg17[%c0_86, %94, %c0_87] : memref<2x8x32xf32, #tpu.memory_space<vmem>>, vector<2x1x32xf32>
      %96 = vector.shape_cast %95 : vector<2x1x32xf32> to vector<2x32xf32>
      %cst_88 = arith.constant dense<0.000000e+00> : vector<2x32xf32>
      %97 = tpu.matmul %arg19, %57, %cst_88 {dimension_numbers = #tpu.dot_dimension_numbers<[1], [0], [0], [1], [0, 0, 1, 1], [], []>} : vector<2x32xf32>, vector<32x32xf32>, vector<2x32xf32> -> vector<2x32xf32>
      %98 = arith.addf %96, %97 : vector<2x32xf32>
      %99 = arith.negf %83 : vector<2x32xf32>
      %100 = math.exp %99 : vector<2x32xf32>
      %cst_89 = arith.constant 1.000000e+00 : f32
      %101 = vector.broadcast %cst_89 : f32 to vector<2x32xf32>
      %102 = arith.addf %101, %100 : vector<2x32xf32>
      %103 = arith.divf %101, %102 : vector<2x32xf32>
      %104 = arith.negf %88 : vector<2x32xf32>
      %105 = math.exp %104 : vector<2x32xf32>
      %cst_90 = arith.constant 1.000000e+00 : f32
      %106 = vector.broadcast %cst_90 : f32 to vector<2x32xf32>
      %107 = arith.addf %106, %105 : vector<2x32xf32>
      %108 = arith.divf %106, %107 : vector<2x32xf32>
      %109 = math.tanh %93 : vector<2x32xf32>
      %110 = arith.negf %98 : vector<2x32xf32>
      %111 = math.exp %110 : vector<2x32xf32>
      %cst_91 = arith.constant 1.000000e+00 : f32
      %112 = vector.broadcast %cst_91 : f32 to vector<2x32xf32>
      %113 = arith.addf %112, %111 : vector<2x32xf32>
      %114 = arith.divf %112, %113 : vector<2x32xf32>
      %115 = arith.mulf %108, %arg20 : vector<2x32xf32>
      %116 = arith.mulf %103, %109 : vector<2x32xf32>
      %117 = arith.addf %115, %116 : vector<2x32xf32>
      %118 = math.tanh %117 : vector<2x32xf32>
      %119 = arith.mulf %114, %118 : vector<2x32xf32>
      %c0_92 = arith.constant 0 : index
      %120 = arith.index_cast %arg18 : i32 to index
      %c0_93 = arith.constant 0 : index
      %121 = vector.load %arg13[%c0_92, %120, %c0_93] : memref<2x8x32xf32, #tpu.memory_space<vmem>>, vector<2x1x32xf32>
      %122 = vector.shape_cast %121 : vector<2x1x32xf32> to vector<2x32xf32>
      %123 = vector.shape_cast %119 : vector<2x32xf32> to vector<2x1x32xf32>
      tpu.vector_store %arg13[%c0_92, %120, %c0_93], %123 {strides = array<i32>} : memref<2x8x32xf32, #tpu.memory_space<vmem>>, vector<2x1x32xf32>,
      scf.yield %119, %117 : vector<2x32xf32>, vector<2x32xf32>
    }
    %c8_i32_60 = arith.constant 8 : i32
    %c0_61 = arith.constant 0 : index
    %c0_62 = arith.constant 0 : index
    %62 = vector.load %arg11[%c0_61, %c0_62] : memref<2x32xf32, #tpu.memory_space<vmem>>, vector<2x32xf32>
    tpu.vector_store %arg11[%c0_61, %c0_62], %61#0 {strides = array<i32>} : memref<2x32xf32, #tpu.memory_space<vmem>>, vector<2x32xf32>,
    %c0_63 = arith.constant 0 : index
    %c0_64 = arith.constant 0 : index
    %63 = vector.load %arg12[%c0_63, %c0_64] : memref<2x32xf32, #tpu.memory_space<vmem>>, vector<2x32xf32>
    tpu.vector_store %arg12[%c0_63, %c0_64], %61#1 {strides = array<i32>} : memref<2x32xf32, #tpu.memory_space<vmem>>, vector<2x32xf32>,
    %c0_65 = arith.constant 0 : index
    %c0_66 = arith.constant 0 : index
    %64 = vector.load %arg7[%c0_65, %c0_66] : memref<1x32xf32, #tpu.memory_space<vmem>>, vector<1x32xf32>
    %c0_67 = arith.constant 0 : index
    %c0_68 = arith.constant 0 : index
    %c0_69 = arith.constant 0 : index
    %65 = vector.load %arg13[%c0_67, %c0_68, %c0_69] : memref<2x8x32xf32, #tpu.memory_space<vmem>>, vector<2x8x32xf32>
    %66 = vector.shape_cast %64 : vector<1x32xf32> to vector<1x1x32xf32>
    %67 = vector.broadcast %66 : vector<1x1x32xf32> to vector<2x8x32xf32>
    %68 = arith.mulf %67, %65 : vector<2x8x32xf32>
    %69 = arith.addf %11, %68 : vector<2x8x32xf32>
    %c0_70 = arith.constant 0 : index
    %c0_71 = arith.constant 0 : index
    %70 = vector.load %arg8[%c0_70, %c0_71] : memref<1x32xf32, #tpu.memory_space<vmem>>, vector<1x32xf32>
    %71 = vector.shape_cast %70 : vector<1x32xf32> to vector<1x1x32xf32>
    %72 = vector.broadcast %71 : vector<1x1x32xf32> to vector<2x8x32xf32>
    %73 = arith.mulf %69, %72 : vector<2x8x32xf32>
    %c0_72 = arith.constant 0 : index
    %c0_73 = arith.constant 0 : index
    %74 = vector.load %arg9[%c0_72, %c0_73] : memref<1x32xf32, #tpu.memory_space<vmem>>, vector<1x32xf32>
    %75 = vector.shape_cast %74 : vector<1x32xf32> to vector<1x1x32xf32>
    %76 = vector.broadcast %75 : vector<1x1x32xf32> to vector<2x8x32xf32>
    %77 = arith.addf %73, %76 : vector<2x8x32xf32>
    %c0_74 = arith.constant 0 : index
    %c0_75 = arith.constant 0 : index
    %c0_76 = arith.constant 0 : index
    %78 = vector.load %arg10[%c0_74, %c0_75, %c0_76] : memref<2x8x32xf32, #tpu.memory_space<vmem>>, vector<2x8x32xf32>
    tpu.vector_store %arg10[%c0_74, %c0_75, %c0_76], %77 {strides = array<i32>} : memref<2x8x32xf32, #tpu.memory_space<vmem>>, vector<2x8x32xf32>,
    return
  }
  func.func @transform_0(%arg0: i32) -> (i32, i32, i32) {
    %c0_i32 = arith.constant 0 : i32
    %c0_i32_0 = arith.constant 0 : i32
    %c0_i32_1 = arith.constant 0 : i32
    return %c0_i32, %arg0, %c0_i32_0 : i32, i32, i32
  }
  func.func @transform_1(%arg0: i32) -> (i32, i32) {
    %c0_i32 = arith.constant 0 : i32
    %c0_i32_0 = arith.constant 0 : i32
    %c0_i32_1 = arith.constant 0 : i32
    return %c0_i32, %c0_i32_0 : i32, i32
  }
  func.func @transform_2(%arg0: i32) -> (i32, i32) {
    %c0_i32 = arith.constant 0 : i32
    %c0_i32_0 = arith.constant 0 : i32
    %c0_i32_1 = arith.constant 0 : i32
    return %c0_i32, %c0_i32_0 : i32, i32
  }
  func.func @transform_3(%arg0: i32) -> (i32, i32, i32) {
    %c0_i32 = arith.constant 0 : i32
    %c0_i32_0 = arith.constant 0 : i32
    %c0_i32_1 = arith.constant 0 : i32
    %c0_i32_2 = arith.constant 0 : i32
    return %c0_i32, %c0_i32_0, %c0_i32_1 : i32, i32, i32
  }
  func.func @transform_4(%arg0: i32) -> (i32, i32, i32) {
    %c0_i32 = arith.constant 0 : i32
    %c0_i32_0 = arith.constant 0 : i32
    %c0_i32_1 = arith.constant 0 : i32
    %c0_i32_2 = arith.constant 0 : i32
    return %c0_i32, %c0_i32_0, %c0_i32_1 : i32, i32, i32
  }
  func.func @transform_5(%arg0: i32) -> (i32, i32, i32) {
    %c0_i32 = arith.constant 0 : i32
    %c0_i32_0 = arith.constant 0 : i32
    %c0_i32_1 = arith.constant 0 : i32
    %c0_i32_2 = arith.constant 0 : i32
    return %c0_i32, %c0_i32_0, %c0_i32_1 : i32, i32, i32
  }
  func.func @transform_6(%arg0: i32) -> (i32, i32) {
    %c0_i32 = arith.constant 0 : i32
    %c0_i32_0 = arith.constant 0 : i32
    %c0_i32_1 = arith.constant 0 : i32
    return %c0_i32, %c0_i32_0 : i32, i32
  }
  func.func @transform_7(%arg0: i32) -> (i32, i32) {
    %c0_i32 = arith.constant 0 : i32
    %c0_i32_0 = arith.constant 0 : i32
    %c0_i32_1 = arith.constant 0 : i32
    return %c0_i32, %c0_i32_0 : i32, i32
  }
  func.func @transform_8(%arg0: i32) -> (i32, i32) {
    %c0_i32 = arith.constant 0 : i32
    %c0_i32_0 = arith.constant 0 : i32
    %c0_i32_1 = arith.constant 0 : i32
    return %c0_i32, %c0_i32_0 : i32, i32
  }
  func.func @transform_9(%arg0: i32) -> (i32, i32, i32) {
    %c0_i32 = arith.constant 0 : i32
    %c0_i32_0 = arith.constant 0 : i32
    %c0_i32_1 = arith.constant 0 : i32
    return %c0_i32, %arg0, %c0_i32_0 : i32, i32, i32
  }
}

</mosaic_0001>

<bundles_post_ra>
// kernel: tpu_custom_call.1
= control target key start
LH: loop header
LB: loop body
LE: loop exit
PB: predicated region body
PF: predicated region fallthrough
CT: control target
= control target key end

     0   :  { %s1979_s0 = inlined_call_operand.hbm [shape: f32[2,16,32], index: 0, kind: input, shape index: {}]   ;;  %s1980_s1 = inlined_call_operand.hbm [shape: f32[1,32], index: 1, kind: input, shape index: {}]   ;;  %s1981_s2 = inlined_call_operand.hbm [shape: f32[1,32], index: 2, kind: input, shape index: {}]   ;;  %s1982_s3 = inlined_call_operand.hbm [shape: bf16[4,32,32], index: 3, kind: input, shape index: {}]   ;;  %s1983_s4 = inlined_call_operand.hbm [shape: f32[4,32,32], index: 4, kind: input, shape index: {}]   ;;  %s1984_s5 = inlined_call_operand.vmem [shape: f32[4,1,32], index: 5, kind: input, shape index: {}]   ;;  %s1985_s6 = inlined_call_operand.vmem [shape: f32[1,32], index: 6, kind: input, shape index: {}]   ;;  %s1986_s7 = inlined_call_operand.vmem [shape: f32[1,32], index: 7, kind: input, shape index: {}]   ;;  %s1987_s8 = inlined_call_operand.vmem [shape: f32[1,32], index: 8, kind: input, shape index: {}]   ;;  %s1988_s9 = inlined_call_operand.hbm [shape: f32[2,16,32], index: 9, kind: output, shape index: {}]  }
   0x1   :  { %1991 = sst [smem:[#allocation23_spill]] %s1980_s1 }
   0x2   :  { %1992 = sst [smem:[#allocation24_spill]] %s1981_s2 }
   0x3   :  { %1993 = sst [smem:[#allocation25_spill]] %s1982_s3 }
   0x4   :  { %1994 = sst [smem:[#allocation26_spill]] %s1983_s4 }
   0x5   :  { %14 = vsyncpa [#allocation10], 0 }
   0x6   :  { %16 = vsyncpa [#allocation10 + $0x1], 0 }
   0x7   :  { %17 = vsyncpa [#allocation13], 0 }
   0x8   :  { %18 = vsyncpa [#allocation16], 0 }
   0x9   :  { %19 = vsyncpa [#allocation11], 0 }
   0xa   :  { %21 = vsyncpa [#allocation11 + $0x1], 0  ;;  %s1605_s30 = smov 0   ;;  %s1607_s10 = smov 0  }
   0xb   :  { %s1609_s11 = smov 0   ;;  %s1611_s12 = smov 0  }
   0xc LB: > { %s1626_s13 = sadd.s32 4294967295, %s1528_s12   ;;  %s1053_s14 = sadd.s32 4294967294, %s1528_s12   ;;  %s1528_s12 = sphi %s1611_s12, %s2016_s12   ;;  %s1524_s11 = sphi %s1609_s11, %s2015_s11   ;;  %s1520_s10 = sphi %s1607_s10, %s2014_s10   ;;  %s1516_s30 = sphi %s1605_s30, %s2013_s30  }
   0xd   : > { %p47_p0 = scmp.ne.s32.totalorder %s1520_s10, %s1516_s30  ;;  %p48_p1 = scmp.eq.s32.totalorder %s1626_s13, 0 }
   0xe   : > { %p239_p2 = scmp.eq.s32.totalorder %s1626_s13, 1  ;;  %p245_p3 = scmp.eq.s32.totalorder %s1053_s14, 1 }
   0xf   : > { %p1635_p4 = por %p48_p1, %p47_p0  ;;  %p1054_p5 = scmp.ge.s32.totalorder %s1528_s12, 1 }
  0x10   : > { %p1640_p6 = por %p245_p3, %p47_p0  ;;  %p252_p7 = scmp.lt.s32.totalorder %s1528_s12, 3 }
  0x11   : > { %s1997_s1 = sld [smem:[#allocation23_spill]]  ;;  %s1542_s21 = smov [#allocation12]  }
  0x12   : > { %p1649_p9 = pnand %p1054_p5, %p252_p7  ;;  %s266_s22 = sshll.u32 %s1542_s21, 4  ;;  %s267_s22 = int_to_ptr.vmem [resolvable:$true] %s266_s22 }
  0x13   : > { %s1999_s3 = sld [smem:[#allocation25_spill]]  ;;  %s1543_s27 = smov [#allocation15]  }
  0x14   : > { %p1151_p11 = pneg %p1649_p9  ;;  %s289_s28 = sshll.u32 %s1543_s27, 4  ;;  %s290_s28 = int_to_ptr.vmem [resolvable:$true] %s289_s28 }
  0x15   : > { %s1544_s29 = smov 64   ;;  %s1545_s14 = smov 4  }
  0x16   : > { %p1661_p12 = pnand %p1151_p11, %p48_p1  ;;  %s2001_s2 = sld [smem:[#allocation24_spill]] }
  0x17   : > { %s264_s19 = sshll.u32 %s1997_s1, 4  ;;  %s1546_s23 = smov [#allocation14]   ;;  %s265_s19 = int_to_ptr.hbm [resolvable:$true] %s264_s19 }
  0x18   : > { %1154 = dma.hbm_to_vmem [thread:$0]  (!%p1661_p12), %s265_s19, 16, %s267_s22, [#allocation13]  }
  0x19   : > { %s287_s25 = sshll.u32 %s1999_s3, 4  ;;  %s278_s24 = sshll.u32 %s1546_s23, 4  ;;  %s288_s25 = int_to_ptr.hbm [resolvable:$true] %s287_s25  ;;  %s279_s24 = int_to_ptr.vmem [resolvable:$true] %s278_s24 }
  0x1a   : > { %1160 = dma.hbm_to_vmem [thread:$0]  (!%p1661_p12), %s288_s25, 1024, %s290_s28, [#allocation16], %s1544_s29, %s1544_s29, %s1545_s14  }
  0x1b   : > { %s2002_s4 = sld [smem:[#allocation26_spill]]  ;;  %s1547_s25 = smov [#allocation17]  }
  0x1c   : > { %s276_s21 = sshll.u32 %s2001_s2, 4  ;;  %s303_s28 = sshll.u32 %s1547_s25, 4  ;;  %s277_s21 = int_to_ptr.hbm [resolvable:$true] %s276_s21  ;;  %s304_s28 = int_to_ptr.vmem [resolvable:$true] %s303_s28 }
  0x1d   : > { %1157 = dma.hbm_to_vmem [thread:$0]  (!%p1661_p12), %s277_s21, 16, %s279_s24, [#allocation13]  }
  0x1e   : > { %s1989_s29 = smov 128   ;;  %s1990_s14 = smov 8  }
  0x1f   : > { %s1683_s17 = sadd.s32 1, %s1528_s12   ;;  %s34_s21 = sadd.s32 1, %s1524_s11 }
  0x20   : > { %s31_s18 = ssub.s32 %s1528_s12, %s1683_s17  ;;  %p41_p0 = scmp.ne.s32.totalorder %s1524_s11, %s1520_s10 }
  0x21   : > { %s301_s27 = sshll.u32 %s2002_s4, 4  ;;  %p32_p13 = scmp.eq.s32.totalorder %s31_s18, 0  ;;  %s302_s27 = int_to_ptr.hbm [resolvable:$true] %s301_s27 }
  0x22   : > { %1163 = dma.hbm_to_vmem [thread:$0]  (!%p1661_p12), %s302_s27, 2048, %s304_s28, [#allocation16], %s1989_s29, %s1989_s29, %s1990_s14  }
  0x23   : > { %p42_p3 = scmp.eq.s32.totalorder %s1528_s12, 0  ;;  %p1696_p7 = por %p239_p2, %p41_p0 }
  0x24   : > { %s1692_s23 = scalar_select %p32_p13, %s1524_s11, %s34_s21  }
  0x25   : > { %p43_p5 = por %p42_p3, %p41_p0  ;;  %p1176_p11 = scmp.lt.s32.totalorder %s1528_s12, 2 }
  0x26   : > { %s329_s26 = sand.u32 1, %s1524_s11   ;;  %s1061_s22 = sshll.u32 %s1528_s12, 3 }
  0x27   : > { %s1060_s19 = sshll.u32 %s329_s26, 4  ;;  %s337_s28 = scalar_lea.hbm %s1979_s0, %s1061_s22 }
  0x28   : > { %s333_s18 = scalar_lea.vmem [#allocation9], %s1060_s19  ;;  %s338_s14 = sshll.u32 %s337_s28, 4  ;;  %s339_s14 = int_to_ptr.hbm [resolvable:$true] %s338_s14 }
  0x29   : > { %s340_s29 = sshll.u32 %s333_s18, 4  ;;  %p1706_p12 = pnand %p1176_p11, %p43_p5  ;;  %s341_s29 = int_to_ptr.vmem [resolvable:$true] %s340_s29 }
  0x2a   : > { %s330_s1 = scalar_lea.sflag [#allocation10], %s329_s26  ;;  %s1412_s2 = sshra.s32 %s339_s14, 4  ;;  %s1413_s2 = int_to_ptr.hbm [resolvable:$true] %s1412_s2 }
  0x2b   : > { %s1414_s3 = scalar_lea.hbm %s1413_s2, 16  ;;  %p1416_p13 = pneg %p1706_p12 }
  0x2c   : > { %p1415_p2 = scmp.ne.s32.totalorder %s1413_s2, %s1414_s3  ;;  %s1419_s27 = scalar_lea.hbm %s1979_s0, 32 }
  0x2d   : > { %p1420_p5 = scmp.lt.s32.totalorder %s1413_s2, %s1979_s0  ;;  %p1421_p11 = scmp.lt.s32.totalorder %s1419_s27, %s1414_s3 }
  0x2e   : > { %p1417_p0 = pnand %p1416_p13, %p1415_p2 }
  0x2f   : > { %p1422_p10 = por %p1421_p11, %p1420_p5 }
  0x30   : > { %p1418_p3 = pneg %p1417_p0 }
  0x32   : > { %p1423_p8 = pnand %p1422_p10, %p1418_p3 }
  0x34   : > { %1426 = shalt.err (!%p1423_p8)
}
  0x35   : > { %s1550_s26 = smov 256   ;;  %s2005_s18 = smov 8  }
  0x36   : > { %s2006_s4 = smov 128   ;;  %352 = sbr.rel (%p1649_p9) target bundleno = 430 (0x1ae), region = 56 }
  0x37   : > { %1167 = dma.hbm_to_vmem [thread:$0]  (!%p1706_p12), %s339_s14, 256, %s341_s29, %s330_s1, %s1550_s26, %s2006_s4, %s2005_s18  }
  0x38   : > { %s1725_s22 = sand.u32 (!%p1649_p9), 1, %s1520_s10  }
  0x39   : > { %s1063_s2 = sshll.u32 (!%p1649_p9), %s1725_s22, 4  ;;  %s355_s3 = scalar_lea.sflag (!%p1649_p9), [#allocation10], %s1725_s22 }
  0x3a   : > { %s358_s19 = scalar_lea.vmem (!%p1649_p9), [#allocation9], %s1063_s2 }
  0x3b   : > { %1499 = dma.done.wait (%p1635_p4), %s355_s3, 256  }
  0x3c   : > { %1501 = vsyncadd (%p1635_p4), %s355_s3, 4294967040 }
  0x3d   : > { %1503 = dma.done.wait (%p48_p1), [#allocation13], 32  }
  0x3e   : > { %1505 = vsyncadd (%p48_p1), [#allocation13], 4294967264 }
  0x3f   : > { %1507 = dma.done.wait (%p48_p1), [#allocation16], 3072  }
  0x40   : > { %1509 = vsyncadd (%p48_p1), [#allocation16], 4294964224  ;;  %s1741_s1 = scalar_lea.vmem [#allocation18], %s1063_s2  ;;  %p2007_p8 = scmp.ne.s32.totalorder %s1626_s13, 0 }
  0x42   : > { %418 = sbr.rel (%p2007_p8) target bundleno = 74 (0x4a), region = 80 }
  0x47   : > { %vm419_vm0 = vcmask 254976   ;;  %v1551_v0 = vmov 0.0  }
  0x48   : > { %420 = vst.msk [vmem:[#allocation2] sm:$0x3] %vm419_vm0, %v1551_v0 }
  0x49   : > { %421 = vst.msk [vmem:[#allocation3] sm:$0x3] %vm419_vm0, %v1551_v0 }
  0x4a PF: > { %v1124_v1 = vld [vmem:[#allocation15 + $0x8] sm:$0xff]  ;;  %v1126_v2 = vld [vmem:[#allocation15 + $0x18] sm:$0xff]  ;;  %v1123_v5 = vld [vmem:[#allocation15] sm:$0xff]  ;;  %vm457_vm1 = vcmask 261120   ;;  %s1811_s28 = smov 0  }
  0x4b   : > { %v1128_v3 = vld [vmem:[#allocation15 + $0x28] sm:$0xff]  ;;  %v1130_v4 = vld [vmem:[#allocation15 + $0x38] sm:$0xff]  ;;  %v1125_v6 = vld [vmem:[#allocation15 + $0x10] sm:$0xff]  ;;  %467 = vmatpush.bf16.msra.mxu0 %v1124_v1  ;;  %505 = vmatpush.bf16.msra.mxu1 %v1126_v2 }
  0x4c   : > { %v1127_v7 = vld [vmem:[#allocation15 + $0x20] sm:$0xff]  ;;  %v1129_v8 = vld [vmem:[#allocation15 + $0x30] sm:$0xff]  ;;  %543 = vmatpush.bf16.msra.mxu2 %v1128_v3  ;;  %581 = vmatpush.bf16.msra.mxu3 %v1130_v4  ;;  %v1251_v11 = vld [vmem:[#allocation12] ss:$0 sm:$0xff] }
  0x4d   : > { %v424_v9 = vld [vmem:[%s358_s19] sm:$0xff]  ;;  %v425_v10 = vld [vmem:[%s358_s19 + $0x8] sm:$0xff] }
  0x4e   : > { %v1252_v12 = vld [vmem:[#allocation14] ss:$0 sm:$0xff]  ;;  %v429_v13 = vmul.f32 %v1251_v11, %v424_v9  ;;  %v430_v14 = vmul.f32 %v1251_v11, %v425_v10  ;;  %v1755_v18 = vld [vmem:[#allocation17] sm:$0xff]  ;;  %v1757_v19 = vld [vmem:[#allocation17 + $0x8] sm:$0xff] }
  0x4f   : > { %468 = vmatpush.bf16.msra.mxu0 %v1123_v5  ;;  %506 = vmatpush.bf16.msra.mxu1 %v1125_v6  ;;  %v1759_v20 = vld [vmem:[#allocation17 + $0x10] sm:$0xff]  ;;  %v1761_v21 = vld [vmem:[#allocation17 + $0x18] sm:$0xff]  ;;  %v1763_v22 = vld [vmem:[#allocation17 + $0x20] sm:$0xff] }
  0x50   : > { %544 = vmatpush.bf16.msra.mxu2 %v1127_v7  ;;  %582 = vmatpush.bf16.msra.mxu3 %v1129_v8  ;;  %v1745_v15 = vadd.f32 %v1252_v12, %v429_v13  ;;  %v1747_v16 = vadd.f32 %v1252_v12, %v430_v14  ;;  %v1765_v23 = vld [vmem:[#allocation17 + $0x28] sm:$0xff]  ;;  %v1767_v24 = vld [vmem:[#allocation17 + $0x30] sm:$0xff]  ;;  %v1769_v25 = vld [vmem:[#allocation17 + $0x38] sm:$0xff] }
  0x51   : > { %v1771_v26 = vld [vmem:[#allocation17 + $0x40] sm:$0xff]  ;;  %v1773_v27 = vld [vmem:[#allocation17 + $0x48] sm:$0xff]  ;;  %v1775_v28 = vld [vmem:[#allocation17 + $0x50] sm:$0xff] }
  0x52   : > { %v436_v17 = vpack.c.bf16 %v1747_v16, %v1745_v15  ;;  %v1777_v29 = vld [vmem:[#allocation17 + $0x58] sm:$0xff]  ;;  %v1779_v30 = vld [vmem:[#allocation17 + $0x60] sm:$0xff]  ;;  %v1781_v31 = vld [vmem:[#allocation17 + $0x68] sm:$0xff] }
  0x53   : > { %v1783_v32 = vld [vmem:[#allocation17 + $0x70] sm:$0xff]  ;;  %v1785_v33 = vld [vmem:[#allocation17 + $0x78] sm:$0xff]  ;;  %v610_v34 = vld [vmem:[#allocation2] sm:$0x3]  }
  0x54   : > { %1078 = vmatmul.msk.bf16.vlgmr.msra.gmra.mxu0 %vm457_vm1, %v436_v17  ;;  %1088 = vmatmul.msk.bf16.vlgmr.msra.gmra.mxu1 %vm457_vm1, %v436_v17  ;;  %v611_v35 = vld [vmem:[#allocation3] sm:$0x3]   ;;  %v1253_v36 = vld [vmem:[%s1984_s5] ss:$0 sm:$0xff]  ;;  %v1254_v37 = vld [vmem:[%s1984_s5 + $0x1] ss:$0 sm:$0xff] }
  0x55   : > { %1098 = vmatmul.msk.bf16.vlgmr.msra.gmra.mxu2 %vm457_vm1, %v436_v17  ;;  %1108 = vmatmul.msk.bf16.vlgmr.msra.gmra.mxu3 %vm457_vm1, %v436_v17  ;;  %v1255_v42 = vld [vmem:[%s1984_s5 + $0x2] ss:$0 sm:$0xff]  ;;  %v1256_v43 = vld [vmem:[%s1984_s5 + $0x3] ss:$0 sm:$0xff] }
  0xd1   : > { %v470_v38 = vpop.f32.mrf.mxu0  ;;  %v508_v39 = vpop.f32.mrf.mxu1 }
  0xd2   : > { %v471_v40 = vadd.f32 %v1253_v36, %v470_v38  ;;  %v509_v41 = vadd.f32 %v1254_v37, %v508_v39 }
  0xd4   : > { %475 = vst.msk [vmem:[#allocation5] sm:$0xff] %vm457_vm1, %v471_v40 }
  0xd5   : > { %513 = vst.msk [vmem:[#allocation6] sm:$0xff] %vm457_vm1, %v509_v41 }
  0xd8   : > { %v546_v44 = vpop.f32.mrf.mxu2  ;;  %v584_v45 = vpop.f32.mrf.mxu3 }
  0xd9   : > { %v547_v46 = vadd.f32 %v1255_v42, %v546_v44  ;;  %v585_v47 = vadd.f32 %v1256_v43, %v584_v45  ;;  %v472_v48 = vpop.f32.mrf.mxu0  ;;  %v510_v49 = vpop.f32.mrf.mxu1 }
  0xda   : > { %v473_v50 = vadd.f32 %v1253_v36, %v472_v48  ;;  %v511_v51 = vadd.f32 %v1254_v37, %v510_v49 }
  0xdb   : > { %551 = vst.msk [vmem:[#allocation7] sm:$0xff] %vm457_vm1, %v547_v46 }
  0xdc   : > { %589 = vst.msk [vmem:[#allocation8] sm:$0xff] %vm457_vm1, %v585_v47 }
  0xdd   : > { %476 = vst.msk [vmem:[#allocation5 + $0x8] sm:$0xff] %vm457_vm1, %v473_v50 }
  0xde   : > { %514 = vst.msk [vmem:[#allocation6 + $0x8] sm:$0xff] %vm457_vm1, %v511_v51 }
  0xe0   : > { %v548_v52 = vpop.f32.mrf.mxu2  ;;  %v586_v53 = vpop.f32.mrf.mxu3 }
  0xe1   : > { %v549_v54 = vadd.f32 %v1255_v42, %v548_v52  ;;  %v587_v55 = vadd.f32 %v1256_v43, %v586_v53 }
  0xe3   : > { %552 = vst.msk [vmem:[#allocation7 + $0x8] sm:$0xff] %vm457_vm1, %v549_v54 }
  0xe4   : > { %590 = vst.msk [vmem:[#allocation8 + $0x8] sm:$0xff] %vm457_vm1, %v587_v55 }
  0xe5 LB: >> { %638 = vmatpush.msra.mxu0 %v1761_v21  ;;  %667 = vmatpush.msra.mxu1 %v1769_v25  ;;  %s620_s26 = scalar_lea.vmem [#allocation5], %s1540_s28  ;;  %s652_s18 = scalar_lea.vmem [#allocation6], %s1540_s28  ;;  %v856_v55 = vrot.slane %v1532_v35, 1  ;;  %s1540_s28 = sphi %s1811_s28, %s617_s28   ;;  %v1536_v34 = vphi %v610_v34, %v2011_v34   ;;  %v1532_v35 = vphi %v611_v35, %v2010_v35  }
  0xe6   : >> { %725 = vmatpush.msra.mxu3 %v1785_v33  ;;  %696 = vmatpush.msra.mxu2 %v1777_v29  ;;  %v621_v56 = vld [vmem:[%s620_s26] sm:$0x1]  ;;  %v622_v58 = vld [vmem:[%s620_s26 + $0x8] sm:$0x1]  ;;  %s710_s2 = scalar_lea.vmem [#allocation8], %s1540_s28  ;;  %s681_s3 = scalar_lea.vmem [#allocation7], %s1540_s28 }
  0xe7   : >> { %639 = vmatpush.msra.mxu0 %v1759_v20  ;;  %668 = vmatpush.msra.mxu1 %v1767_v24  ;;  %v653_v57 = vld [vmem:[%s652_s18] sm:$0x1]  ;;  %v654_v62 = vld [vmem:[%s652_s18 + $0x8] sm:$0x1]  ;;  %s869_s19 = scalar_lea.vmem [#allocation4], %s1540_s28  ;;  %s617_s28 = sadd.s32 1, %s1540_s28  }
  0xe8   : >> { %726 = vmatpush.msra.mxu3 %v1783_v32  ;;  %697 = vmatpush.msra.mxu2 %v1775_v28  ;;  %p614_p1 = scmp.ge.s32.totalorder %s617_s28, 8  }
  0xe9   : >> { %640 = vmatpush.msra.mxu0 %v1757_v19  ;;  %669 = vmatpush.msra.mxu1 %v1765_v23  ;;  %s1120_s14 = sshll.u32 (%p614_p1), %s1626_s13, 3  ;;  %v1291_v19 = vld [vmem:[%s1987_s8] ss:$0 sm:$0xff] (%p614_p1)  ;;  %s923_s18 = sshll.u32 (%p614_p1), %s1741_s1, 4  ;;  %s924_s18 = int_to_ptr.vmem [resolvable:$true] %s923_s18 }
  0xea   : >> { %727 = vmatpush.msra.mxu3 %v1781_v31  ;;  %698 = vmatpush.msra.mxu2 %v1773_v27  ;;  %v682_v39 = vld [vmem:[%s681_s3] sm:$0x1]  ;;  %v683_v47 = vld [vmem:[%s681_s3 + $0x8] sm:$0x1]  ;;  %s922_s26 = scalar_lea.hbm (%p614_p1), %s1988_s9, %s1120_s14  ;;  %s912_s13 = scalar_lea.sflag (%p614_p1), [#allocation11], %s1725_s22 }
  0xeb   : >> { %641 = vmatpush.msra.mxu0 %v1755_v18  ;;  %670 = vmatpush.msra.mxu1 %v1763_v22  ;;  %v711_v7 = vld [vmem:[%s710_s2] sm:$0x1]  ;;  %v712_v9 = vld [vmem:[%s710_s2 + $0x8] sm:$0x1]  ;;  %s925_s2 = sshll.u32 (%p614_p1), %s922_s26, 4  ;;  %s1462_s20 = scalar_lea.hbm (%p614_p1), %s1988_s9, 32  ;;  %s926_s2 = int_to_ptr.hbm [resolvable:$true] %s925_s2 }
  0xec   : >> { %728 = vmatpush.msra.mxu3 %v1779_v30  ;;  %1109 = vmatmul.msk.f32.vlgmr.msra.gmra.mxu0 %vm457_vm1, %v1536_v34  ;;  %s1456_s3 = sshra.s32 (%p614_p1), %s926_s2, 4  ;;  %s1457_s3 = int_to_ptr.hbm [resolvable:$true] %s1456_s3 }
  0xed   : >> { %1110 = vmatmul.msk.f32.vlgmr.msra.gmra.mxu1 %vm457_vm1, %v1536_v34  ;;  %1112 = vmatmul.msk.f32.vlgmr.msra.gmra.mxu3 %vm457_vm1, %v1536_v34  ;;  %p1463_p12 = scmp.lt.s32.totalorder (%p614_p1), %s1457_s3, %s1988_s9 }
  0xee   : >> { %699 = vmatpush.msra.mxu2 %v1771_v26 }
  0xef   : >> { %1111 = vmatmul.msk.f32.vlgmr.msra.gmra.mxu2 %vm457_vm1, %v1536_v34 }
 0x169   : >> { %v643_v59 = vpop.f32.mrf.mxu0 }
 0x16a   : >> { %v647_v60 = vrot.slane %v643_v59, 1  ;;  %v650_v61 = vadd.f32 %v643_v59, %v621_v56  ;;  %v672_v63 = vpop.f32.mrf.mxu1 }
 0x16b   : >> { %v676_v0 = vrot.slane %v672_v63, 1  ;;  %v679_v1 = vadd.f32 %v672_v63, %v653_v57 }
 0x16c   : >> { %v651_v2 = vadd.f32 %v647_v60, %v622_v58  ;;  %v1113_v3 = vmul.f32 -1.442695, %v650_v61 }
 0x16d   : >> { %v680_v4 = vadd.f32 %v676_v0, %v654_v62  ;;  %v1115_v5 = vmul.f32 -1.442695, %v679_v1 }
 0x16e   : >> { %1257 = vpow2.f32 %v1113_v3  ;;  %v1114_v6 = vmul.f32 -1.442695, %v651_v2 }
 0x16f   : >> { %1259 = vpow2.f32 %v1115_v5  ;;  %v1116_v8 = vmul.f32 -1.442695, %v680_v4 }
 0x170   : >> { %1261 = vpow2.f32 %v1114_v6  ;;  %v730_v10 = vpop.f32.mrf.mxu3 }
 0x171   : >> { %1263 = vpow2.f32 %v1116_v8  ;;  %v734_v11 = vrot.slane %v730_v10, 1  ;;  %v737_v12 = vadd.f32 %v730_v10, %v711_v7 }
 0x172   : >> { %v701_v40 = vpop.f32.mrf.mxu2 }
 0x173   : >> { %v738_v13 = vadd.f32 %v734_v11, %v712_v9  ;;  %v1117_v14 = vmul.f32 -1.442695, %v737_v12  ;;  %v705_v45 = vrot.slane %v701_v40, 1  ;;  %v708_v46 = vadd.f32 %v701_v40, %v682_v39 }
 0x174   : >> { %v1258_v17 = vpop.eup %1257 }
 0x175   : >> { %v1260_v34 = vpop.eup %1259  ;;  %v1843_v36 = vadd.f32 1.0, %v1258_v17  ;;  %1265 = vpow2.f32 %v1117_v14  ;;  %v1118_v43 = vmul.f32 -1.442695, %v738_v13  ;;  %v709_v54 = vadd.f32 %v705_v45, %v683_v47 }
 0x176   : >> { %v1262_v37 = vpop.eup %1261  ;;  %v1845_v38 = vadd.f32 1.0, %v1260_v34 }
 0x177   : >> { %v1264_v41 = vpop.eup %1263  ;;  %v1848_v42 = vadd.f32 1.0, %v1262_v37  ;;  %1267 = vrcp.f32 %v1843_v36  ;;  %v756_v50 = vand.u32 2147483647, %v1843_v36  ;;  %v758_v52 = vand.u32 2147483648, %v1843_v36 }
 0x178   : >> { %v1851_v44 = vadd.f32 1.0, %v1264_v41  ;;  %1269 = vrcp.f32 %v1845_v38  ;;  %v796_v49 = vand.u32 2147483648, %v1845_v38  ;;  %vm790_vm2 = vweird.f32 %v1845_v38 }
 0x179   : >> { %1271 = vrcp.f32 %v1848_v42  ;;  %vm752_vm3 = vweird.f32 %v1843_v36  ;;  %vm1870_vm5 = vcmp.eq.f32.partialorder %v756_v50, 8.507059e+37  ;;  %v759_v2 = vor.u32 1.1754944e-38, %v758_v52 }
 0x17a   : >> { %1273 = vrcp.f32 %v1851_v44  ;;  %v797_v60 = vor.u32 1.1754944e-38, %v796_v49  ;;  %vm805_vm4 = vweird.f32 %v1851_v44  ;;  %v811_v1 = vand.u32 2147483648, %v1851_v44 }
 0x17b   : >> { %v1266_v48 = vpop.eup %1265  ;;  %1275 = vpow2.f32 %v1118_v43  ;;  %vm767_vm6 = vweird.f32 %v1848_v42  ;;  %v771_v6 = vand.u32 2147483647, %v1848_v42  ;;  %v773_v7 = vand.u32 2147483648, %v1848_v42 }
 0x17c   : >> { %v1858_v51 = vadd.f32 1.0, %v1266_v48  ;;  %1277 = vtanh.f32 %v708_v46  ;;  %v794_v11 = vand.u32 2147483647, %v1845_v38  ;;  %v812_v34 = vor.u32 1.1754944e-38, %v811_v1 }
 0x17d   : >> { %v1268_v53 = vpop.eup %1267  ;;  %v809_v37 = vand.u32 2147483647, %v1851_v44  ;;  %v774_v45 = vor.u32 1.1754944e-38, %v773_v7 }
 0x17e   : >> { %v1270_v56 = vpop.eup %1269  ;;  %v748_v57 = vmul.f32 %v1268_v53, %v1843_v36  ;;  %1279 = vrcp.f32 %v1858_v51  ;;  %vm753_vm7 = vweird.f32 %v1268_v53  ;;  %vm795_vm13 = vcmp.eq.f32.partialorder %v794_v11, 8.507059e+37 }
 0x17f   : >> { %v1866_v58 = vpop.eup %1271  ;;  %v786_v59 = vmul.f32 %v1270_v56, %v1845_v38  ;;  %1281 = vtanh.f32 %v709_v54  ;;  %vm791_vm8 = vweird.f32 %v1270_v56  ;;  %vm754_vm10 = vmor %vm752_vm3, %vm753_vm7  ;;  %vm810_vm15 = vcmp.eq.f32.partialorder %v809_v37, 8.507059e+37 }
 0x180   : >> { %v1274_v62 = vpop.eup %1273  ;;  %v749_v63 = vsub.f32 1.0, %v748_v57  ;;  %v763_v0 = vmul.f32 %v1866_v58, %v1848_v42  ;;  %vm768_vm11 = vweird.f32 %v1866_v58  ;;  %vm792_vm12 = vmor %vm790_vm2, %vm791_vm8  ;;  %vm772_vm2 = vcmp.eq.f32.partialorder %v771_v6, 8.507059e+37 }
 0x181   : >> { %v1276_v3 = vpop.eup %1275  ;;  %v787_v4 = vsub.f32 1.0, %v786_v59  ;;  %v801_v5 = vmul.f32 %v1274_v62, %v1851_v44  ;;  %vm806_vm9 = vweird.f32 %v1274_v62  ;;  %vm769_vm0 = vmor %vm767_vm6, %vm768_vm11  ;;  %vm876_vm6 = vcmask 1041409  }
 0x182   : >> { %v764_v8 = vsub.f32 1.0, %v763_v0  ;;  %v1881_v9 = vadd.f32 1.0, %v1276_v3  ;;  %v750_v10 = vmul.f32 %v1268_v53, %v749_v63  ;;  %v1278_v12 = vpop.eup %1277  ;;  %vm807_vm14 = vmor %vm805_vm4, %vm806_vm9  ;;  %vm830_vm4 = vweird.f32 %v1858_v51 }
 0x183   : >> { %v788_v13 = vmul.f32 %v1270_v56, %v787_v4  ;;  %v802_v14 = vsub.f32 1.0, %v801_v5  ;;  %v834_v5 = vand.u32 2147483647, %v1858_v51  ;;  %vm870_vm11 = vcmask 253952  }
 0x184   : >> { %v1884_v17 = vpop.eup %1279  ;;  %1283 = vrcp.f32 %v1881_v9  ;;  %v751_v41 = vadd.f32 %v1268_v53, %v750_v10  ;;  %v765_v43 = vmul.f32 %v1866_v58, %v764_v8  ;;  %vm845_vm8 = vweird.f32 %v1881_v9 }
 0x185   : >> { %v803_v39 = vmul.f32 %v1274_v62, %v802_v14  ;;  %v826_v40 = vmul.f32 %v1884_v17, %v1858_v51  ;;  %v789_v46 = vadd.f32 %v1270_v56, %v788_v13  ;;  %v1282_v54 = vpop.eup %1281  ;;  %vm831_vm3 = vweird.f32 %v1884_v17 }
 0x186   : >> { %v755_v48 = vsel %vm754_vm10, %v1268_v53, %v751_v41  ;;  %v766_v50 = vadd.f32 %v1866_v58, %v765_v43  ;;  %vm832_vm7 = vmor %vm830_vm4, %vm831_vm3  ;;  %v849_v10 = vand.u32 2147483647, %v1881_v9  ;;  %vm835_vm10 = vcmp.eq.f32.partialorder %v834_v5, 8.507059e+37 }
 0x187   : >> { %v827_v47 = vsub.f32 1.0, %v826_v40  ;;  %v804_v49 = vadd.f32 %v1274_v62, %v803_v39  ;;  %v760_v36 = vsel %vm1870_vm5, %v759_v2, %v755_v48  ;;  %v793_v52 = vsel %vm792_vm12, %v1270_v56, %v789_v46 }
 0x188   : >> { %v798_v38 = vsel %vm795_vm13, %v797_v60, %v793_v52  ;;  %v861_v59 = vmul.f32 %v1278_v12, %v760_v36  ;;  %v770_v63 = vsel %vm769_vm0, %v1866_v58, %v766_v50  ;;  %v836_v58 = vand.u32 2147483648, %v1858_v51 }
 0x189   : >> { %v828_v57 = vmul.f32 %v1884_v17, %v827_v47  ;;  %v808_v53 = vsel %vm807_vm14, %v1274_v62, %v804_v49  ;;  %v859_v0 = vmul.f32 %v1532_v35, %v798_v38  ;;  %v775_v1 = vsel %vm772_vm2, %v774_v45, %v770_v63  ;;  %v1289_v45 = vld [vmem:[%s1985_s6] ss:$0 sm:$0xff] (%p614_p1) }
 0x18a   : >> { %v1284_v44 = vpop.eup %1283  ;;  %v813_v61 = vsel %vm810_vm15, %v812_v34, %v808_v53  ;;  %v862_v3 = vmul.f32 %v1282_v54, %v775_v1  ;;  %v851_v35 = vand.u32 2147483648, %v1881_v9  ;;  %v837_v11 = vor.u32 1.1754944e-38, %v836_v58  ;;  %v1290_v47 = vld [vmem:[%s1986_s7] ss:$0 sm:$0xff] (%p614_p1) }
 0x18b   : >> { %v841_v56 = vmul.f32 %v1284_v44, %v1881_v9  ;;  %v860_v2 = vmul.f32 %v856_v55, %v813_v61  ;;  %v863_v4 = vadd.f32 %v861_v59, %v859_v0  ;;  %v829_v42 = vadd.f32 %v1884_v17, %v828_v57 }
 0x18c   : >> { %vm846_vm5 = vweird.f32 %v1284_v44  ;;  %v852_v34 = vor.u32 1.1754944e-38, %v851_v35  ;;  %vm850_vm12 = vcmp.eq.f32.partialorder %v849_v10, 8.507059e+37  ;;  %vm884_vm13 = vcmask (%p614_p1), 254976  }
 0x18d   : >> { %v842_v60 = vsub.f32 1.0, %v841_v56  ;;  %v864_v62 = vadd.f32 %v862_v3, %v860_v2  ;;  %1285 = vtanh.f32 %v863_v4  ;;  %v833_v7 = vsel %vm832_vm7, %v1884_v17, %v829_v42  ;;  %vm847_vm9 = vmor %vm845_vm8, %vm846_vm5 }
 0x18e   : >> { %v838_v14 = vsel %vm835_vm10, %v837_v11, %v833_v7 }
 0x18f   : >> { %v843_v6 = vmul.f32 %v1284_v44, %v842_v60  ;;  %1287 = vtanh.f32 %v864_v62  ;;  %v881_v55 = vrot.slane %v864_v62, 7 }
 0x191   : >> { %v844_v8 = vadd.f32 %v1284_v44, %v843_v6  ;;  %v882_v51 = vsel %vm876_vm6, %v881_v55, %v863_v4  }
 0x192   : >> { %v2010_v35 = vmov %v882_v51  ;;  %886 = vst.msk [vmem:[#allocation3] sm:$0x3] (%p614_p1), %vm884_vm13, %v882_v51 }
 0x193   : >> { %v848_v12 = vsel %vm847_vm9, %v1284_v44, %v844_v8  ;;  %v1286_v13 = vpop.eup %1285 }
 0x194   : >> { %v867_v37 = vmul.f32 %v1286_v13, %v838_v14  ;;  %v853_v17 = vsel %vm850_vm12, %v852_v34, %v848_v12 }
 0x195   : >> { %v1288_v39 = vpop.eup %1287 }
 0x196   : >> { %v868_v40 = vmul.f32 %v1288_v39, %v853_v17  ;;  %871 = vst.msk [vmem:[%s869_s19] sm:$0x1] %vm870_vm11, %v867_v37 }
 0x197   : > { %616 = sbr.rel (!%p614_p1) target bundleno = 229 (0xe5), region = 142 }
 0x198   : >> { %872 = vst.msk [vmem:[%s869_s19 + $0x8] sm:$0x1] %vm870_vm11, %v868_v40  ;;  %v875_v41 = vrot.slane %v868_v40, 7  ;;  %s1458_s19 = scalar_lea.hbm (%p614_p1), %s1457_s3, 16 }
 0x199   : > { %p1459_p4 = scmp.ne.s32.totalorder (%p614_p1), %s1457_s3, %s1458_s19  ;;  %p1464_p2 = scmp.lt.s32.totalorder (%p614_p1), %s1462_s20, %s1458_s19 }
 0x19a   : >> { %v877_v9 = vsel %vm876_vm6, %v875_v41, %v867_v37  }
 0x19b   : >> { %v2011_v34 = vmov %v877_v9  ;;  %885 = vst.msk [vmem:[#allocation2] sm:$0x3] (%p614_p1), %vm884_vm13, %v877_v9  ;;  %p1460_p9 = pnand (%p614_p1), %p1459_p4, %p1696_p7  ;;  %p1465_p13 = por (%p614_p1), %p1464_p2, %p1463_p12 }
 0x19d   : > { %p1461_p10 = pneg %p1460_p9 }
 0x19f   : > { %v888_v43 = vld [vmem:[#allocation4] sm:$0xff]  ;;  %v889_v48 = vld [vmem:[#allocation4 + $0x8] sm:$0xff]  ;;  %p1466_p0 = pnand %p1465_p13, %p1461_p10 }
 0x1a0   : > { %v893_v46 = vmul.f32 %v1289_v45, %v888_v43  ;;  %v894_v49 = vmul.f32 %v1289_v45, %v889_v48 }
 0x1a2   : > { %v895_v18 = vadd.f32 %v893_v46, %v1745_v15  ;;  %v896_v20 = vadd.f32 %v894_v49, %v1747_v16 }
 0x1a4   : > { %v901_v21 = vmul.f32 %v1290_v47, %v895_v18  ;;  %v902_v22 = vmul.f32 %v1290_v47, %v896_v20 }
 0x1a6   : > { %v907_v23 = vadd.f32 %v1291_v19, %v901_v21  ;;  %v908_v24 = vadd.f32 %v1291_v19, %v902_v22 }
 0x1a8   : > { %909 = vst.msk [vmem:[%s1741_s1] sm:$0xff] %vm457_vm1, %v907_v23 }
 0x1a9   : > { %910 = vst.msk [vmem:[%s1741_s1 + $0x8] sm:$0xff] %vm457_vm1, %v908_v24 }
 0x1aa   : > { %1469 = shalt.err (!%p1466_p0)
}
 0x1ab   : > { %s1552_s22 = smov 128   ;;  %s1553_s1 = smov 256  }
 0x1ac   : > { %s1554_s21 = smov 8  }
 0x1ad   : > { %1149 = dma.vmem_to_hbm [thread:$0]  (%p1696_p7), %s924_s18, 256, %s926_s2, %s912_s13, %s1552_s22, %s1553_s1, %s1554_s21  }
 0x1ae PF: > { %s940_s27 = sand.u32 1, %s1516_s30   ;;  %p2012_p3 = scmp.ge.s32.totalorder %s1528_s12, 2 }
 0x1af   : > { %s941_s25 = scalar_lea.sflag [#allocation11], %s940_s27 }
 0x1b0   : > { %p1169_p5 = pnand %p2012_p3, %p1640_p6 }
 0x1b2   : > { %p1170_p11 = pneg %p1169_p5 }
 0x1b4   : > { %1511 = dma.done.wait (%p1170_p11), %s941_s25, 256  }
 0x1b5   : > { %1513 = vsyncadd (%p1170_p11), %s941_s25, 4294967040  ;;  %p24_p8 = scmp.ge.s32.totalorder %s1683_s17, 4   ;;  %s2013_s30 = smov %s1520_s10 }
 0x1b6   : > { %s2014_s10 = smov %s1524_s11  ;;  %s2015_s11 = smov %s1692_s23 }
 0x1b7   : > { %s2016_s12 = smov %s1683_s17  ;;  %26 = sbr.rel (!%p24_p8) target bundleno = 12 (0xc), region = 153 }
 0x1bc   :  { %947 = vsyncpa [#allocation10], 1 }
 0x1bd   :  { %949 = vsyncpa [#allocation10 + $0x1], 1 }
 0x1be   :  { %950 = vsyncpa [#allocation13], 1 }
 0x1bf   :  { %951 = vsyncpa [#allocation16], 1 }
 0x1c0   :  { %952 = vsyncpa [#allocation11], 1 }
 0x1c1   :  { %954 = vsyncpa [#allocation11 + $0x1], 1 }

</bundles_post_ra>
